<compile_context>
chip_gen: v7x
topology: tpu7x:2x2x1
jax: 0.10.0
libtpu: 0.0.40
codegen_flags: <defaults>
</compile_context>

<pallas_src>
import math

import jax
import jax.numpy as jnp
from jax.experimental import pallas as pl
from jax.experimental.pallas import tpu as pltpu


def _dice_partial_kernel(pred_ref, true_ref, inter_ref, psum_ref, tsum_ref):
    s = pl.program_id(1)  # reduction ("arbitrary") axis

    @pl.when(s == 0)
    def _():
        inter_ref[...] = jnp.zeros_like(inter_ref)
        psum_ref[...] = jnp.zeros_like(psum_ref)
        tsum_ref[...] = jnp.zeros_like(tsum_ref)

    p = pred_ref[...].astype(jnp.float32)   # (N, C, tR, 128)
    t = true_ref[...].astype(jnp.float32)   # (N, C, tR, 128)
    C = p.shape[1]

    # Numerically-stable softmax over the channel axis.  C is a leading
    # (non-vreg) axis, so the max / sum-of-exp are unrolled VPU elementwise
    # ops across C (tR, 128)-tiled slices — no cross-lane XLU work.
    m = p[:, 0]
    for c in range(1, C):
        m = jnp.maximum(m, p[:, c])
    e = jnp.exp(p - m[:, None])
    z = e[:, 0]
    for c in range(1, C):
        z = z + e[:, c]
    # One exact reciprocal per voxel (not per channel); multiplies replace the
    # full-tensor divide.  Exact (approx=False) keeps loss precision.
    prob = e * pl.reciprocal(z)[:, None]

    # Deferred reduction: lane/sublane-parallel partial sums with pure VPU
    # adds; the single cross-lane reduce happens once in the JAX epilogue.
    inter_ref[...] += prob * t
    psum_ref[...] += prob
    tsum_ref[...] += t


def _pick_tile_rows(N, C, R, in_bytes, vmem_budget_bytes):
    """Largest row tile (multiple of 8, or the full R) fitting the VMEM budget."""
    cands = [r for r in range(8, R + 1, 8) if R % r == 0]
    if R not in cands:
        cands.append(R)
    cands.sort()
    # Per row of 128 lanes: 2 inputs x 2 pipeline buffers (native dtype)
    # + 3 VMEM-resident f32 accumulator outputs.
    per_row = N * C * 128 * (2 * 2 * in_bytes + 3 * 4)
    max_rows = max(1, min(vmem_budget_bytes // per_row, 512))
    best = cands[0]
    for r in cands:
        if r <= max_rows:
            best = r
    return best


def soft_dice_loss_with_logit(y_pred, y_true, smooth=1e-06, *,
                              tile_rows=None, n_split=None,
                              vmem_budget_bytes=16 * 1024 * 1024):
    """y_pred, y_true: (N, C, D, H, W). Returns scalar loss (float32)."""
    assert y_pred.shape == y_true.shape, (y_pred.shape, y_true.shape)
    N, C = y_pred.shape[:2]
    S = math.prod(y_pred.shape[2:])
    # TODO(synk): support spatial sizes not divisible by 128 (needs a lane
    # mask on the last tile).
    assert S % 128 == 0, "flattened spatial size must be a multiple of 128"
    R = S // 128

    # Native dtype straight into the kernel (no HBM f32 copies); the reshape is
    # layout-preserving (free).
    p = y_pred.reshape(N, C, R, 128)
    t = y_true.reshape(N, C, R, 128)

    in_bytes = max(p.dtype.itemsize, t.dtype.itemsize)
    if tile_rows is None:
        tile_rows = _pick_tile_rows(N, C, R, in_bytes, vmem_budget_bytes)
    assert R % tile_rows == 0
    assert tile_rows % 8 == 0 or tile_rows == R, "tile must respect (8,128) tiling"

    steps_total = R // tile_rows
    if n_split is None:
        # 2-way split feeds both v7x TensorCores; neutral on 1-TC chips.
        n_split = 2 if (steps_total >= 2 and steps_total % 2 == 0) else 1
    assert steps_total % n_split == 0
    steps = steps_total // n_split

    in_spec = pl.BlockSpec((N, C, tile_rows, 128),
                           lambda c, s: (0, 0, c * steps + s, 0))
    out_spec = pl.BlockSpec((None, N, C, tile_rows, 128),
                            lambda c, s: (c, 0, 0, 0, 0))
    out_sds = jax.ShapeDtypeStruct((n_split, N, C, tile_rows, 128), jnp.float32)

    inter_p, psum_p, tsum_p = pl.pallas_call(
        _dice_partial_kernel,
        out_shape=(out_sds, out_sds, out_sds),
        grid_spec=pltpu.PrefetchScalarGridSpec(
            num_scalar_prefetch=0,
            grid=(n_split, steps),
            in_specs=[in_spec, in_spec],
            out_specs=[out_spec, out_spec, out_spec],
        ),
        compiler_params=pltpu.CompilerParams(
            dimension_semantics=("parallel", "arbitrary")),
    )(p, t)

    # Tiny epilogue in plain JAX: one cross-lane reduce + the dice formula.
    inter = jnp.sum(inter_p, axis=(0, 3, 4))   # (N, C)
    psum = jnp.sum(psum_p, axis=(0, 3, 4))     # (N, C)
    tsum = jnp.sum(tsum_p, axis=(0, 3, 4))     # (N, C)
    dice = (2.0 * inter + smooth) / (psum + tsum + smooth)
    return 1.0 - jnp.mean(dice)


def _reference(y_pred, y_true, smooth=1e-06):
    logit = jax.nn.softmax(y_pred.astype(jnp.float32), axis=1)
    t = y_true.astype(jnp.float32)
    inter = jnp.sum(logit * t, axis=(2, 3, 4))
    union = jnp.sum(logit, axis=(2, 3, 4)) + jnp.sum(t, axis=(2, 3, 4))
    return 1.0 - jnp.mean((2.0 * inter + smooth) / (union + smooth))


if __name__ == "__main__":
    key = jax.random.PRNGKey(0)
    k1, k2 = jax.random.split(key)
    N, C, D, H, W = 2, 4, 16, 16, 16          # S = 4096 -> R = 32 rows of 128 lanes
    y_pred = jax.random.normal(k1, (N, C, D, H, W), dtype=jnp.float32)
    labels = jax.random.randint(k2, (N, D, H, W), 0, C)
    y_true = jax.nn.one_hot(labels, C, axis=1).astype(jnp.float32)

    ref = jax.block_until_ready(_reference(y_pred, y_true))

    # Small explicit tiles: exercises the pipelined reduction grid and the
    # 2-way core split (grid = (2, 2)).
    loss_small = jax.block_until_ready(
        soft_dice_loss_with_logit(y_pred, y_true, tile_rows=8))
    assert jnp.allclose(loss_small, ref, atol=1e-5, rtol=1e-5), (loss_small, ref)

    # Default auto-tuned tile (whole spatial extent fits one block here).
    loss_auto = jax.block_until_ready(soft_dice_loss_with_logit(y_pred, y_true))
    assert jnp.allclose(loss_auto, ref, atol=1e-5, rtol=1e-5), (loss_auto, ref)

    print("KERNEL_OK")
</pallas_src>

<mosaic_0001>
module attributes {stable_mosaic.version = 11 : i64} {
  func.func @_dice_partial_kernel(%arg0: i32, %arg1: i32, %arg2: memref<2x4x8x128xf32, #tpu.memory_space<vmem>>, %arg3: memref<2x4x8x128xf32, #tpu.memory_space<vmem>>, %arg4: memref<1x2x4x8x128xf32, #tpu.memory_space<vmem>>, %arg5: memref<1x2x4x8x128xf32, #tpu.memory_space<vmem>>, %arg6: memref<1x2x4x8x128xf32, #tpu.memory_space<vmem>>) attributes {dimension_semantics = [#tpu.dimension_semantics<parallel>, #tpu.dimension_semantics<arbitrary>], iteration_bounds = array<i64: 2, 2>, scalar_prefetch = 0 : i64, scratch_operands = 0 : i64, tpu.core_type = #tpu.core_type<tc>, window_params = [{transform_indices = @transform_0, window_bounds = array<i64: 2, 4, 8, 128>}, {transform_indices = @transform_1, window_bounds = array<i64: 2, 4, 8, 128>}, {transform_indices = @transform_2, window_bounds = array<i64: 1, 2, 4, 8, 128>}, {transform_indices = @transform_3, window_bounds = array<i64: 1, 2, 4, 8, 128>}, {transform_indices = @transform_4, window_bounds = array<i64: 1, 2, 4, 8, 128>}]} {
    %c0_i32 = arith.constant 0 : i32
    %0 = arith.cmpi eq, %arg1, %c0_i32 : i32
    %1 = arith.extui %0 : i1 to i32
    %c0_i32_0 = arith.constant 0 : i32
    %2 = arith.cmpi ne, %1, %c0_i32_0 : i32
    scf.if %2 {
      %cst = arith.constant 0.000000e+00 : f32
      %54 = vector.broadcast %cst : f32 to vector<2x4x8x128xf32>
      %c0_38 = arith.constant 0 : index
      %c0_39 = arith.constant 0 : index
      %c0_40 = arith.constant 0 : index
      %c0_41 = arith.constant 0 : index
      %c0_42 = arith.constant 0 : index
      %55 = vector.load %arg4[%c0_38, %c0_39, %c0_40, %c0_41, %c0_42] : memref<1x2x4x8x128xf32, #tpu.memory_space<vmem>>, vector<1x2x4x8x128xf32>
      %56 = vector.shape_cast %55 : vector<1x2x4x8x128xf32> to vector<2x4x8x128xf32>
      %57 = vector.shape_cast %54 : vector<2x4x8x128xf32> to vector<1x2x4x8x128xf32>
      tpu.vector_store %arg4[%c0_38, %c0_39, %c0_40, %c0_41, %c0_42], %57 {strides = array<i32>} : memref<1x2x4x8x128xf32, #tpu.memory_space<vmem>>, vector<1x2x4x8x128xf32>,
      %cst_43 = arith.constant 0.000000e+00 : f32
      %58 = vector.broadcast %cst_43 : f32 to vector<2x4x8x128xf32>
      %c0_44 = arith.constant 0 : index
      %c0_45 = arith.constant 0 : index
      %c0_46 = arith.constant 0 : index
      %c0_47 = arith.constant 0 : index
      %c0_48 = arith.constant 0 : index
      %59 = vector.load %arg5[%c0_44, %c0_45, %c0_46, %c0_47, %c0_48] : memref<1x2x4x8x128xf32, #tpu.memory_space<vmem>>, vector<1x2x4x8x128xf32>
      %60 = vector.shape_cast %59 : vector<1x2x4x8x128xf32> to vector<2x4x8x128xf32>
      %61 = vector.shape_cast %58 : vector<2x4x8x128xf32> to vector<1x2x4x8x128xf32>
      tpu.vector_store %arg5[%c0_44, %c0_45, %c0_46, %c0_47, %c0_48], %61 {strides = array<i32>} : memref<1x2x4x8x128xf32, #tpu.memory_space<vmem>>, vector<1x2x4x8x128xf32>,
      %cst_49 = arith.constant 0.000000e+00 : f32
      %62 = vector.broadcast %cst_49 : f32 to vector<2x4x8x128xf32>
      %c0_50 = arith.constant 0 : index
      %c0_51 = arith.constant 0 : index
      %c0_52 = arith.constant 0 : index
      %c0_53 = arith.constant 0 : index
      %c0_54 = arith.constant 0 : index
      %63 = vector.load %arg6[%c0_50, %c0_51, %c0_52, %c0_53, %c0_54] : memref<1x2x4x8x128xf32, #tpu.memory_space<vmem>>, vector<1x2x4x8x128xf32>
      %64 = vector.shape_cast %63 : vector<1x2x4x8x128xf32> to vector<2x4x8x128xf32>
      %65 = vector.shape_cast %62 : vector<2x4x8x128xf32> to vector<1x2x4x8x128xf32>
      tpu.vector_store %arg6[%c0_50, %c0_51, %c0_52, %c0_53, %c0_54], %65 {strides = array<i32>} : memref<1x2x4x8x128xf32, #tpu.memory_space<vmem>>, vector<1x2x4x8x128xf32>,
    } else {
    }
    %c0 = arith.constant 0 : index
    %c0_1 = arith.constant 0 : index
    %c0_2 = arith.constant 0 : index
    %c0_3 = arith.constant 0 : index
    %3 = vector.load %arg2[%c0, %c0_1, %c0_2, %c0_3] : memref<2x4x8x128xf32, #tpu.memory_space<vmem>>, vector<2x4x8x128xf32>
    %c0_4 = arith.constant 0 : index
    %c0_5 = arith.constant 0 : index
    %c0_6 = arith.constant 0 : index
    %c0_7 = arith.constant 0 : index
    %4 = vector.load %arg3[%c0_4, %c0_5, %c0_6, %c0_7] : memref<2x4x8x128xf32, #tpu.memory_space<vmem>>, vector<2x4x8x128xf32>
    %5 = vector.extract_strided_slice %3 {offsets = [0, 0, 0, 0], sizes = [2, 1, 8, 128], strides = [1, 1, 1, 1]} : vector<2x4x8x128xf32> to vector<2x1x8x128xf32>
    %6 = vector.shape_cast %5 : vector<2x1x8x128xf32> to vector<2x8x128xf32>
    %7 = vector.extract_strided_slice %3 {offsets = [0, 1, 0, 0], sizes = [2, 1, 8, 128], strides = [1, 1, 1, 1]} : vector<2x4x8x128xf32> to vector<2x1x8x128xf32>
    %8 = vector.shape_cast %7 : vector<2x1x8x128xf32> to vector<2x8x128xf32>
    %9 = arith.maximumf %6, %8 : vector<2x8x128xf32>
    %10 = vector.extract_strided_slice %3 {offsets = [0, 2, 0, 0], sizes = [2, 1, 8, 128], strides = [1, 1, 1, 1]} : vector<2x4x8x128xf32> to vector<2x1x8x128xf32>
    %11 = vector.shape_cast %10 : vector<2x1x8x128xf32> to vector<2x8x128xf32>
    %12 = arith.maximumf %9, %11 : vector<2x8x128xf32>
    %13 = vector.extract_strided_slice %3 {offsets = [0, 3, 0, 0], sizes = [2, 1, 8, 128], strides = [1, 1, 1, 1]} : vector<2x4x8x128xf32> to vector<2x1x8x128xf32>
    %14 = vector.shape_cast %13 : vector<2x1x8x128xf32> to vector<2x8x128xf32>
    %15 = arith.maximumf %12, %14 : vector<2x8x128xf32>
    %16 = vector.shape_cast %15 : vector<2x8x128xf32> to vector<2x1x8x128xf32>
    %17 = vector.broadcast %16 : vector<2x1x8x128xf32> to vector<2x4x8x128xf32>
    %18 = arith.subf %3, %17 : vector<2x4x8x128xf32>
    %19 = math.exp %18 : vector<2x4x8x128xf32>
    %20 = vector.extract_strided_slice %19 {offsets = [0, 0, 0, 0], sizes = [2, 1, 8, 128], strides = [1, 1, 1, 1]} : vector<2x4x8x128xf32> to vector<2x1x8x128xf32>
    %21 = vector.shape_cast %20 : vector<2x1x8x128xf32> to vector<2x8x128xf32>
    %22 = vector.extract_strided_slice %19 {offsets = [0, 1, 0, 0], sizes = [2, 1, 8, 128], strides = [1, 1, 1, 1]} : vector<2x4x8x128xf32> to vector<2x1x8x128xf32>
    %23 = vector.shape_cast %22 : vector<2x1x8x128xf32> to vector<2x8x128xf32>
    %24 = arith.addf %21, %23 : vector<2x8x128xf32>
    %25 = vector.extract_strided_slice %19 {offsets = [0, 2, 0, 0], sizes = [2, 1, 8, 128], strides = [1, 1, 1, 1]} : vector<2x4x8x128xf32> to vector<2x1x8x128xf32>
    %26 = vector.shape_cast %25 : vector<2x1x8x128xf32> to vector<2x8x128xf32>
    %27 = arith.addf %24, %26 : vector<2x8x128xf32>
    %28 = vector.extract_strided_slice %19 {offsets = [0, 3, 0, 0], sizes = [2, 1, 8, 128], strides = [1, 1, 1, 1]} : vector<2x4x8x128xf32> to vector<2x1x8x128xf32>
    %29 = vector.shape_cast %28 : vector<2x1x8x128xf32> to vector<2x8x128xf32>
    %30 = arith.addf %27, %29 : vector<2x8x128xf32>
    %31 = tpu.reciprocal %30 : vector<2x8x128xf32> -> vector<2x8x128xf32>
    %32 = vector.shape_cast %31 : vector<2x8x128xf32> to vector<2x1x8x128xf32>
    %33 = vector.broadcast %32 : vector<2x1x8x128xf32> to vector<2x4x8x128xf32>
    %34 = arith.mulf %19, %33 : vector<2x4x8x128xf32>
    %c0_8 = arith.constant 0 : index
    %c0_9 = arith.constant 0 : index
    %c0_10 = arith.constant 0 : index
    %c0_11 = arith.constant 0 : index
    %c0_12 = arith.constant 0 : index
    %35 = vector.load %arg4[%c0_8, %c0_9, %c0_10, %c0_11, %c0_12] : memref<1x2x4x8x128xf32, #tpu.memory_space<vmem>>, vector<1x2x4x8x128xf32>
    %36 = vector.shape_cast %35 : vector<1x2x4x8x128xf32> to vector<2x4x8x128xf32>
    %37 = arith.mulf %34, %4 : vector<2x4x8x128xf32>
    %38 = arith.addf %36, %37 : vector<2x4x8x128xf32>
    %c0_13 = arith.constant 0 : index
    %c0_14 = arith.constant 0 : index
    %c0_15 = arith.constant 0 : index
    %c0_16 = arith.constant 0 : index
    %c0_17 = arith.constant 0 : index
    %39 = vector.load %arg4[%c0_13, %c0_14, %c0_15, %c0_16, %c0_17] : memref<1x2x4x8x128xf32, #tpu.memory_space<vmem>>, vector<1x2x4x8x128xf32>
    %40 = vector.shape_cast %39 : vector<1x2x4x8x128xf32> to vector<2x4x8x128xf32>
    %41 = vector.shape_cast %38 : vector<2x4x8x128xf32> to vector<1x2x4x8x128xf32>
    tpu.vector_store %arg4[%c0_13, %c0_14, %c0_15, %c0_16, %c0_17], %41 {strides = array<i32>} : memref<1x2x4x8x128xf32, #tpu.memory_space<vmem>>, vector<1x2x4x8x128xf32>,
    %c0_18 = arith.constant 0 : index
    %c0_19 = arith.constant 0 : index
    %c0_20 = arith.constant 0 : index
    %c0_21 = arith.constant 0 : index
    %c0_22 = arith.constant 0 : index
    %42 = vector.load %arg5[%c0_18, %c0_19, %c0_20, %c0_21, %c0_22] : memref<1x2x4x8x128xf32, #tpu.memory_space<vmem>>, vector<1x2x4x8x128xf32>
    %43 = vector.shape_cast %42 : vector<1x2x4x8x128xf32> to vector<2x4x8x128xf32>
    %44 = arith.addf %43, %34 : vector<2x4x8x128xf32>
    %c0_23 = arith.constant 0 : index
    %c0_24 = arith.constant 0 : index
    %c0_25 = arith.constant 0 : index
    %c0_26 = arith.constant 0 : index
    %c0_27 = arith.constant 0 : index
    %45 = vector.load %arg5[%c0_23, %c0_24, %c0_25, %c0_26, %c0_27] : memref<1x2x4x8x128xf32, #tpu.memory_space<vmem>>, vector<1x2x4x8x128xf32>
    %46 = vector.shape_cast %45 : vector<1x2x4x8x128xf32> to vector<2x4x8x128xf32>
    %47 = vector.shape_cast %44 : vector<2x4x8x128xf32> to vector<1x2x4x8x128xf32>
    tpu.vector_store %arg5[%c0_23, %c0_24, %c0_25, %c0_26, %c0_27], %47 {strides = array<i32>} : memref<1x2x4x8x128xf32, #tpu.memory_space<vmem>>, vector<1x2x4x8x128xf32>,
    %c0_28 = arith.constant 0 : index
    %c0_29 = arith.constant 0 : index
    %c0_30 = arith.constant 0 : index
    %c0_31 = arith.constant 0 : index
    %c0_32 = arith.constant 0 : index
    %48 = vector.load %arg6[%c0_28, %c0_29, %c0_30, %c0_31, %c0_32] : memref<1x2x4x8x128xf32, #tpu.memory_space<vmem>>, vector<1x2x4x8x128xf32>
    %49 = vector.shape_cast %48 : vector<1x2x4x8x128xf32> to vector<2x4x8x128xf32>
    %50 = arith.addf %49, %4 : vector<2x4x8x128xf32>
    %c0_33 = arith.constant 0 : index
    %c0_34 = arith.constant 0 : index
    %c0_35 = arith.constant 0 : index
    %c0_36 = arith.constant 0 : index
    %c0_37 = arith.constant 0 : index
    %51 = vector.load %arg6[%c0_33, %c0_34, %c0_35, %c0_36, %c0_37] : memref<1x2x4x8x128xf32, #tpu.memory_space<vmem>>, vector<1x2x4x8x128xf32>
    %52 = vector.shape_cast %51 : vector<1x2x4x8x128xf32> to vector<2x4x8x128xf32>
    %53 = vector.shape_cast %50 : vector<2x4x8x128xf32> to vector<1x2x4x8x128xf32>
    tpu.vector_store %arg6[%c0_33, %c0_34, %c0_35, %c0_36, %c0_37], %53 {strides = array<i32>} : memref<1x2x4x8x128xf32, #tpu.memory_space<vmem>>, vector<1x2x4x8x128xf32>,
    return
  }
  func.func @transform_0(%arg0: i32, %arg1: i32) -> (i32, i32, i32, i32) {
    %c2_i32 = arith.constant 2 : i32
    %0 = arith.muli %arg0, %c2_i32 : i32
    %1 = arith.addi %0, %arg1 : i32
    %c0_i32 = arith.constant 0 : i32
    %c0_i32_0 = arith.constant 0 : i32
    %c0_i32_1 = arith.constant 0 : i32
    %c0_i32_2 = arith.constant 0 : i32
    return %c0_i32, %c0_i32_0, %1, %c0_i32_1 : i32, i32, i32, i32
  }
  func.func @transform_1(%arg0: i32, %arg1: i32) -> (i32, i32, i32, i32) {
    %c2_i32 = arith.constant 2 : i32
    %0 = arith.muli %arg0, %c2_i32 : i32
    %1 = arith.addi %0, %arg1 : i32
    %c0_i32 = arith.constant 0 : i32
    %c0_i32_0 = arith.constant 0 : i32
    %c0_i32_1 = arith.constant 0 : i32
    %c0_i32_2 = arith.constant 0 : i32
    return %c0_i32, %c0_i32_0, %1, %c0_i32_1 : i32, i32, i32, i32
  }
  func.func @transform_2(%arg0: i32, %arg1: i32) -> (i32, i32, i32, i32, i32) {
    %c0_i32 = arith.constant 0 : i32
    %c0_i32_0 = arith.constant 0 : i32
    %c0_i32_1 = arith.constant 0 : i32
    %c0_i32_2 = arith.constant 0 : i32
    %c0_i32_3 = arith.constant 0 : i32
    return %arg0, %c0_i32, %c0_i32_0, %c0_i32_1, %c0_i32_2 : i32, i32, i32, i32, i32
  }
  func.func @transform_3(%arg0: i32, %arg1: i32) -> (i32, i32, i32, i32, i32) {
    %c0_i32 = arith.constant 0 : i32
    %c0_i32_0 = arith.constant 0 : i32
    %c0_i32_1 = arith.constant 0 : i32
    %c0_i32_2 = arith.constant 0 : i32
    %c0_i32_3 = arith.constant 0 : i32
    return %arg0, %c0_i32, %c0_i32_0, %c0_i32_1, %c0_i32_2 : i32, i32, i32, i32, i32
  }
  func.func @transform_4(%arg0: i32, %arg1: i32) -> (i32, i32, i32, i32, i32) {
    %c0_i32 = arith.constant 0 : i32
    %c0_i32_0 = arith.constant 0 : i32
    %c0_i32_1 = arith.constant 0 : i32
    %c0_i32_2 = arith.constant 0 : i32
    %c0_i32_3 = arith.constant 0 : i32
    return %arg0, %c0_i32, %c0_i32_0, %c0_i32_1, %c0_i32_2 : i32, i32, i32, i32, i32
  }
}

</mosaic_0001>

<bundles_post_ra>
// kernel: tpu_custom_call.1
= control target key start
LH: loop header
LB: loop body
LE: loop exit
PB: predicated region body
PF: predicated region fallthrough
CT: control target
= control target key end

     0   :  { %s1669_s0 = inlined_call_operand.hbm [shape: f32[2,4,32,128], index: 0, kind: input, shape index: {}]   ;;  %s1670_s1 = inlined_call_operand.hbm [shape: f32[2,4,32,128], index: 1, kind: input, shape index: {}]   ;;  %s1671_s2 = inlined_call_operand.hbm [shape: f32[2,2,4,8,128], index: 2, kind: output, shape index: {0}]   ;;  %s1672_s3 = inlined_call_operand.hbm [shape: f32[2,2,4,8,128], index: 3, kind: output, shape index: {1}]   ;;  %s1673_s4 = inlined_call_operand.hbm [shape: f32[2,2,4,8,128], index: 4, kind: output, shape index: {2}]  }
   0x1   :  { %1685 = sst [smem:[#allocation23_spill]] %s1669_s0 }
   0x2   :  { %10 = vsyncpa [#allocation3], 0 }
   0x3   :  { %12 = vsyncpa [#allocation3 + $0x1], 0 }
   0x4   :  { %13 = vsyncpa [#allocation6], 0 }
   0x5   :  { %15 = vsyncpa [#allocation6 + $0x1], 0 }
   0x6   :  { %16 = vsyncpa [#allocation4], 0 }
   0x7   :  { %18 = vsyncpa [#allocation4 + $0x1], 0 }
   0x8   :  { %19 = vsyncpa [#allocation9], 0 }
   0x9   :  { %21 = vsyncpa [#allocation9 + $0x1], 0  ;;  %s1160_s15 = smov 0   ;;  %s1162_s16 = smov 0  }
   0xa   :  { %s1164_s17 = smov 0   ;;  %s1166_s18 = smov 0  }
   0xb   :  { %s1168_s19 = smov 0   ;;  %s1170_s20 = smov 0  }
   0xc   :  { %s1172_s21 = smov 0   ;;  %s1174_s22 = smov 0  }
   0xd   :  { %s1176_s23 = smov 0   ;;  %s1178_s24 = smov 0  }
   0xe   :  { %s1180_s25 = smov 0  }
   0xf LB: > { %1686 = sst [smem:[#allocation15_spill]] %s1090_s17  ;;  %s1214_s26 = sadd.s32 4294967295, %s1122_s25   ;;  %s1122_s25 = sphi %s1180_s25, %s27_s25   ;;  %s1118_s24 = sphi %s1178_s24, %s1721_s24   ;;  %s1114_s23 = sphi %s1176_s23, %s1715_s23   ;;  %s1110_s22 = sphi %s1174_s22, %s1714_s22   ;;  %s1106_s21 = sphi %s1172_s21, %s1713_s21   ;;  %s1102_s20 = sphi %s1170_s20, %s1712_s20   ;;  %s1098_s19 = sphi %s1168_s19, %s1720_s19   ;;  %s1094_s18 = sphi %s1166_s18, %s1719_s18   ;;  %s1090_s17 = sphi %s1164_s17, %s1710_s17   ;;  %s1086_s16 = sphi %s1162_s16, %s1718_s16   ;;  %s1082_s15 = sphi %s1160_s15, %s1717_s15  }
  0x10   : > { %1687 = sst [smem:[#allocation16_spill]] %s1102_s20  ;;  %s1675_s27 = sadd.s32 4294967294, %s1122_s25  }
  0x11   : > { %1688 = sst [smem:[#allocation17_spill]] %s1114_s23  ;;  %s36_s28 = sadd.s32 1, %s1114_s23 }
  0x12   : > { %1689 = sst [smem:[#allocation18_spill]] %s1118_s24  ;;  %s39_s29 = sadd.s32 1, %s1118_s24 }
  0x13   : > { %p37_p0 = scmp.ge.s32.totalorder %s36_s28, 2  ;;  %s700_s30 = sshll.u32 %s1118_s24, 1 }
  0x14   : > { %s1221_s5 = sadd.s32 %s1114_s23, %s700_s30  ;;  %s50_s6 = sadd.s32 1, %s1102_s20 }
  0x15   : > { %s1723_s28 = smov (%p37_p0, %s36_s28), 0  ;;  %s1725_s29 = smov (!%p37_p0, %s39_s29), %s1118_s24 }
  0x16   : > { %1690 = sst [smem:[#allocation19_spill]] %s1723_s28  ;;  %p57_p1 = scmp.ne.s32.totalorder %s1102_s20, %s1098_s19 }
  0x17   : > { %p58_p2 = scmp.eq.s32.totalorder %s1122_s25, 0  ;;  %p41_p3 = scmp.ge.s32.totalorder %s1725_s29, 2 }
  0x18   : > { %p63_p4 = scmp.ne.s32.totalorder %s1098_s19, %s1094_s18  ;;  %p64_p6 = scmp.eq.s32.totalorder %s1214_s26, 0 }
  0x19   : > { %p1231_p5 = por %p58_p2, %p57_p1  ;;  %s1727_s29 = smov (%p41_p3, %s1725_s29), 0 }
  0x1a   : > { %1692 = sst [smem:[#allocation20_spill]] %s1727_s29  ;;  %p1238_p7 = por %p64_p6, %p63_p4 }
  0x1b   : > { %s106_s9 = sadd.s32 1, %s1090_s17  ;;  %s701_s10 = sshll.u32 %s1727_s29, 1 }
  0x1c   : > { %s1693_s8 = scalar_select %p1238_p7, 1, 0 }
  0x1d   : > { %s103_s11 = ssub.s32 %s1118_s24, %s1727_s29  ;;  %s46_s12 = sadd.s32 %s701_s10, %s1723_s28 }
  0x1e   : > { %p104_p8 = scmp.eq.s32.totalorder %s103_s11, 0  ;;  %s47_s13 = ssub.s32 %s1221_s5, %s46_s12 }
  0x1f   : > { %p116_p9 = scmp.ne.s32.totalorder %s1090_s17, %s1086_s16  ;;  %p48_p10 = scmp.eq.s32.totalorder %s47_s13, 0 }
  0x20   : > { %p117_p11 = scmp.eq.s32.totalorder %s1214_s26, 3  ;;  %p122_p13 = scmp.ne.s32.totalorder %s1086_s16, %s1082_s15 }
  0x21   : > { %s1252_s14 = scalar_select %p104_p8, %s1090_s17, %s106_s9  }
  0x22   : > { %s1255_s18 = scalar_select %p48_p10, %s1102_s20, %s50_s6  }
  0x23   : > { %1694 = sst [smem:[#allocation21_spill]] %s1252_s14  ;;  %p1257_p12 = por %p117_p11, %p116_p9 }
  0x24   : > { %1695 = sst [smem:[#allocation22_spill]] %s1255_s18  ;;  %p123_p0 = scmp.eq.s32.totalorder %s1675_s27, 3 }
  0x25   : > { %s1696_s30 = scalar_select %p1257_p12, 1, 0 }
  0x26   : > { %p760_p1 = scmp.lt.s32.totalorder %s1122_s25, 4  ;;  %s1267_s10 = sand.u32 1, %s1102_s20  }
  0x27   : > { %p1269_p2 = por %p123_p0, %p122_p13  ;;  %s1678_s9 = sshll.u32 %s1267_s10, 6 }
  0x28   : > { %s1679_s6 = sshll.u32 %s1221_s5, 7  ;;  %s1698_s0 = sld [smem:[#allocation23_spill]] }
  0x29   : > { %s1697_s11 = scalar_select %p1269_p2, 1, 0 }
  0x2a   : > { %s199_s27 = scalar_lea.vmem [#allocation2], %s1678_s9  ;;  %p1286_p3 = pnand %p760_p1, %p1231_p5 }
  0x2b   : > { %s207_s28 = sshll.u32 %s199_s27, 4  ;;  %s1290_s28 = int_to_ptr.vmem [resolvable:$true] %s207_s28 }
  0x2c   : > { %p878_p8 = pneg %p1286_p3 }
  0x2e   : > { %s1280_s29 = scalar_lea.hbm %s1698_s0, %s1679_s6  ;;  %s881_s9 = scalar_lea.hbm %s1698_s0, 4096 }
  0x2f   : > { %s876_s13 = scalar_lea.hbm %s1280_s29, 1024  ;;  %p882_p5 = scmp.lt.u32.totalorder %s1280_s29, %s1698_s0 }
  0x30   : > { %p877_p6 = scmp.ne.s32.totalorder %s1280_s29, %s876_s13  ;;  %p883_p11 = scmp.lt.u32.totalorder %s881_s9, %s876_s13 }
  0x31   : > { %p885_p0 = scmp.lt.u32.totalorder %s876_s13, %s1280_s29 }
  0x32   : > { %p879_p9 = pnand %p878_p8, %p877_p6  ;;  %p884_p13 = por %p883_p11, %p882_p5 }
  0x34   : > { %p880_p10 = pneg %p879_p9  ;;  %p886_p1 = por %p885_p0, %p884_p13 }
  0x36   : > { %p887_p4 = pnand %p886_p1, %p880_p10 }
  0x38   : > { %890 = shalt.err (!%p887_p4)
}
  0x39   : > { %s891_s12 = scalar_lea.vmem %s1290_s28, 1024  ;;  %s1124_s27 = smov [#allocation2]  }
  0x3a   : > { %p892_p6 = scmp.ne.s32.totalorder %s1290_s28, %s891_s12  ;;  %s896_s7 = sshll.u32 %s1124_s27, 4  ;;  %s897_s7 = int_to_ptr.vmem [resolvable:$false] %s896_s7 }
  0x3b   : > { %s898_s23 = scalar_lea.vmem %s897_s7, 2048  ;;  %p899_p12 = scmp.lt.s32.totalorder %s1290_s28, %s897_s7 }
  0x3c   : > { %p894_p9 = pnand %p892_p6, %p878_p8  ;;  %p900_p5 = scmp.lt.s32.totalorder %s898_s23, %s891_s12 }
  0x3e   : > { %p895_p2 = pneg %p894_p9  ;;  %p901_p11 = por %p900_p5, %p899_p12 }
  0x40   : > { %p902_p13 = pnand %p901_p11, %p895_p2 }
  0x42   : > { %905 = shalt.err (!%p902_p13)
}
  0x43   : > { %s1125_s9 = smov 512   ;;  %s1126_s6 = smov 128  }
  0x44   : > { %s1127_s13 = smov 8   ;;  %s1700_s12 = scalar_lea.sflag [#allocation3], %s1267_s10 }
  0x45   : > { %746 = dma.hbm_to_vmem [thread:$0]  (!%p1286_p3), %s1280_s29, 1024, %s1290_s28, %s1700_s12, %s1125_s9, %s1126_s6, %s1127_s13  }
  0x46   : > { %p237_p12 = scmp.lt.s32.totalorder %s1122_s25, 5  ;;  %s1701_s27 = sshll.u32 %s1221_s5, 7 }
  0x47   : > { %s1330_s0 = scalar_lea.hbm %s1670_s1, %s1701_s27  ;;  %p1702_p2 = scmp.ge.s32.totalorder %s1122_s25, 1 }
  0x48   : > { %s1704_s20 = sshll.u32 %s1267_s10, 6  ;;  %s218_s28 = scalar_lea.sflag [#allocation6], %s1267_s10 }
  0x49   : > { %p1334_p4 = pnand %p1702_p2, %p237_p12  ;;  %s221_s14 = scalar_lea.vmem [#allocation5], %s1704_s20 }
  0x4a   : > { %s229_s17 = sshll.u32 %s221_s14, 4  ;;  %s906_s29 = scalar_lea.hbm %s1330_s0, 1024  ;;  %s1340_s17 = int_to_ptr.vmem [resolvable:$true] %s229_s17 }
  0x4b   : > { %p907_p10 = scmp.ne.s32.totalorder %s1330_s0, %s906_s29  ;;  %s911_s27 = scalar_lea.hbm %s1670_s1, 4096 }
  0x4c   : > { %p912_p6 = scmp.lt.u32.totalorder %s1330_s0, %s1670_s1  ;;  %p913_p9 = scmp.lt.u32.totalorder %s911_s27, %s906_s29 }
  0x4d   : > { %p909_p0 = pnand %p907_p10, %p878_p8  ;;  %p915_p11 = scmp.lt.u32.totalorder %s906_s29, %s1330_s0 }
  0x4e   : > { %p914_p5 = por %p913_p9, %p912_p6 }
  0x4f   : > { %p910_p1 = pneg %p909_p0 }
  0x50   : > { %p916_p13 = por %p915_p11, %p914_p5 }
  0x52   : > { %p917_p12 = pnand %p916_p13, %p910_p1 }
  0x54   : > { %920 = shalt.err (!%p917_p12)
}
  0x55   : > { %s921_s20 = scalar_lea.vmem %s1340_s17, 1024  ;;  %s1128_s14 = smov [#allocation5]  }
  0x56   : > { %p922_p2 = scmp.ne.s32.totalorder %s1340_s17, %s921_s20  ;;  %s926_s5 = sshll.u32 %s1128_s14, 4  ;;  %s927_s5 = int_to_ptr.vmem [resolvable:$false] %s926_s5 }
  0x57   : > { %s928_s12 = scalar_lea.vmem %s927_s5, 2048  ;;  %p929_p7 = scmp.lt.s32.totalorder %s1340_s17, %s927_s5 }
  0x58   : > { %p924_p10 = pnand %p922_p2, %p878_p8  ;;  %p930_p6 = scmp.lt.s32.totalorder %s928_s12, %s921_s20 }
  0x5a   : > { %p925_p0 = pneg %p924_p10  ;;  %p931_p9 = por %p930_p6, %p929_p7 }
  0x5c   : > { %p932_p5 = pnand %p931_p9, %p925_p0 }
  0x5e   : > { %935 = shalt.err (!%p932_p5)
}
  0x5f   : > { %749 = dma.hbm_to_vmem [thread:$0]  (!%p1286_p3), %s1330_s0, 1024, %s1340_s17, %s218_s28, %s1125_s9, %s1126_s6, %s1127_s13  }
  0x60   : > { %241 = sbr.rel (%p1334_p4) target bundleno = 239 (0xef), region = 28  ;;  %s243_s29 = sand.u32 (!%p1334_p4), 1, %s1098_s19  }
  0x61   : > { %s713_s27 = sshll.u32 (!%p1334_p4), %s243_s29, 6  ;;  %s244_s7 = scalar_lea.sflag (!%p1334_p4), [#allocation3], %s243_s29 }
  0x62   : > { %s1374_s23 = scalar_lea.vmem (!%p1334_p4), [#allocation2], %s713_s27  ;;  %p1705_p7 = scmp.ne.s32.totalorder (!%p1334_p4), %s1693_s8, 0 }
  0x67   : > { %1065 = dma.done.wait (%p1705_p7), %s244_s7, 1024  }
  0x68   : > { %1067 = vsyncadd (%p1705_p7), %s244_s7, 4294966272  ;;  %s253_s24 = scalar_lea.sflag [#allocation6], %s243_s29  ;;  %s1380_s10 = scalar_lea.vmem [#allocation5], %s713_s27 }
  0x69   : > { %1069 = dma.done.wait (%p1705_p7), %s253_s24, 1024  }
  0x6a   : > { %1071 = vsyncadd (%p1705_p7), %s253_s24, 4294966272  ;;  %s279_s0 = sand.u32 1, %s1086_s16   ;;  %p718_p3 = scmp.ne.s32.totalorder %s1106_s21, 0 }
  0x6b   : > { %s715_s17 = sshll.u32 %s279_s0, 6  ;;  %v1129_v0 = vmov (!%p718_p3), 0.0  }
  0x6c   : > { %s1389_s18 = scalar_lea.vmem [#allocation7], %s715_s17  ;;  %s1391_s9 = scalar_lea.vmem [#allocation8], %s715_s17 }
  0x6d   : > { %s1393_s6 = scalar_lea.vmem [#allocation10], %s715_s17  ;;  %303 = sbr.rel (%p718_p3) target bundleno = 121 (0x79), region = 40  ;;  %304 = vst [vmem:[%s1389_s18] sm:$0xff] (!%p718_p3), %v1129_v0  ;;  %305 = vst [vmem:[%s1389_s18 + $0x8] sm:$0xff] (!%p718_p3), %v1129_v0 }
  0x6e   : > { %306 = vst [vmem:[%s1389_s18 + $0x10] sm:$0xff] (!%p718_p3), %v1129_v0  ;;  %307 = vst [vmem:[%s1389_s18 + $0x18] sm:$0xff] (!%p718_p3), %v1129_v0 }
  0x6f   : > { %308 = vst [vmem:[%s1389_s18 + $0x20] sm:$0xff] (!%p718_p3), %v1129_v0  ;;  %309 = vst [vmem:[%s1389_s18 + $0x28] sm:$0xff] (!%p718_p3), %v1129_v0 }
  0x70   : > { %310 = vst [vmem:[%s1389_s18 + $0x30] sm:$0xff] (!%p718_p3), %v1129_v0  ;;  %311 = vst [vmem:[%s1389_s18 + $0x38] sm:$0xff] (!%p718_p3), %v1129_v0 }
  0x71   : > { %312 = vst [vmem:[%s1391_s9] sm:$0xff] (!%p718_p3), %v1129_v0  ;;  %313 = vst [vmem:[%s1391_s9 + $0x8] sm:$0xff] (!%p718_p3), %v1129_v0 }
  0x72   : > { %314 = vst [vmem:[%s1391_s9 + $0x10] sm:$0xff] (!%p718_p3), %v1129_v0  ;;  %315 = vst [vmem:[%s1391_s9 + $0x18] sm:$0xff] (!%p718_p3), %v1129_v0 }
  0x73   : > { %316 = vst [vmem:[%s1391_s9 + $0x20] sm:$0xff] (!%p718_p3), %v1129_v0  ;;  %317 = vst [vmem:[%s1391_s9 + $0x28] sm:$0xff] (!%p718_p3), %v1129_v0 }
  0x74   : > { %318 = vst [vmem:[%s1391_s9 + $0x30] sm:$0xff] %v1129_v0  ;;  %319 = vst [vmem:[%s1391_s9 + $0x38] sm:$0xff] %v1129_v0 }
  0x75   : > { %320 = vst [vmem:[%s1393_s6] sm:$0xff] %v1129_v0  ;;  %321 = vst [vmem:[%s1393_s6 + $0x8] sm:$0xff] %v1129_v0 }
  0x76   : > { %322 = vst [vmem:[%s1393_s6 + $0x10] sm:$0xff] %v1129_v0  ;;  %323 = vst [vmem:[%s1393_s6 + $0x18] sm:$0xff] %v1129_v0 }
  0x77   : > { %324 = vst [vmem:[%s1393_s6 + $0x20] sm:$0xff] %v1129_v0  ;;  %325 = vst [vmem:[%s1393_s6 + $0x28] sm:$0xff] %v1129_v0 }
  0x78   : > { %326 = vst [vmem:[%s1393_s6 + $0x30] sm:$0xff] %v1129_v0  ;;  %327 = vst [vmem:[%s1393_s6 + $0x38] sm:$0xff] %v1129_v0 }
  0x79 PF: > { %v328_v1 = vld [vmem:[%s1374_s23] sm:$0xff]  ;;  %v329_v2 = vld [vmem:[%s1374_s23 + $0x8] sm:$0xff]  ;;  %v330_v3 = vld [vmem:[%s1374_s23 + $0x10] sm:$0xff]  ;;  %s475_s21 = sand.u32 1, %s1214_s26   ;;  %s1487_s8 = sshll.u32 %s1110_s22, 10 }
  0x7a   : > { %v344_v4 = vmax.f32 %v328_v1, %v329_v2  ;;  %v331_v5 = vld [vmem:[%s1374_s23 + $0x18] sm:$0xff]  ;;  %v332_v6 = vld [vmem:[%s1374_s23 + $0x20] sm:$0xff]  ;;  %v333_v8 = vld [vmem:[%s1374_s23 + $0x28] sm:$0xff]  ;;  %s510_s13 = sshll.u32 %s1391_s9, 4  ;;  %s526_s22 = sshll.u32 %s1393_s6, 4  ;;  %s1513_s13 = int_to_ptr.vmem [resolvable:$true] %s510_s13  ;;  %s1529_s22 = int_to_ptr.vmem [resolvable:$true] %s526_s22 }
  0x7b   : > { %v334_v9 = vld [vmem:[%s1374_s23 + $0x30] sm:$0xff]  ;;  %v345_v10 = vmax.f32 %v332_v6, %v333_v8  ;;  %v335_v12 = vld [vmem:[%s1374_s23 + $0x38] sm:$0xff]  ;;  %v1429_v26 = vld [vmem:[%s1380_s10] sm:$0xff]  ;;  %s1507_s14 = scalar_lea.hbm %s1672_s3, %s1487_s8  ;;  %s494_s5 = sshll.u32 %s1389_s18, 4  ;;  %s1541_s5 = int_to_ptr.vmem [resolvable:$true] %s494_s5 }
  0x7c   : > { %v346_v7 = vmax.f32 %v344_v4, %v330_v3  ;;  %v1432_v28 = vld [vmem:[%s1380_s10 + $0x8] sm:$0xff]  ;;  %v1435_v29 = vld [vmem:[%s1380_s10 + $0x10] sm:$0xff]  ;;  %v1438_v30 = vld [vmem:[%s1380_s10 + $0x18] sm:$0xff]  ;;  %s1519_s27 = scalar_lea.hbm %s1673_s4, %s1487_s8  ;;  %s1539_s24 = scalar_lea.hbm %s1671_s2, %s1487_s8 }
  0x7d   : > { %v347_v13 = vmax.f32 %v345_v10, %v334_v9  ;;  %v446_v31 = vld [vmem:[%s1393_s6] sm:$0xff]  ;;  %v1445_v36 = vld [vmem:[%s1380_s10 + $0x28] sm:$0xff]  ;;  %v1448_v37 = vld [vmem:[%s1380_s10 + $0x30] sm:$0xff]  ;;  %s936_s17 = scalar_lea.vmem %s1513_s13, 1024  ;;  %p1706_p4 = scmp.ne.s32.totalorder %s1696_s30, 0 }
  0x7e   : > { %v348_v11 = vmax.f32 %v346_v7, %v331_v5  ;;  %v1442_v35 = vld [vmem:[%s1380_s10 + $0x20] sm:$0xff]  ;;  %v454_v39 = vadd.f32 %v446_v31, %v1429_v26  ;;  %v447_v40 = vld [vmem:[%s1393_s6 + $0x8] sm:$0xff]  ;;  %v448_v41 = vld [vmem:[%s1393_s6 + $0x10] sm:$0xff]  ;;  %p937_p8 = scmp.ne.s32.totalorder %s1513_s13, %s936_s17 }
  0x7f   : > { %v349_v18 = vmax.f32 %v347_v13, %v335_v12  ;;  %v449_v42 = vld [vmem:[%s1393_s6 + $0x18] sm:$0xff]  ;;  %v455_v43 = vadd.f32 %v447_v40, %v1432_v28  ;;  %v456_v44 = vadd.f32 %v448_v41, %v1435_v29  ;;  %v450_v46 = vld [vmem:[%s1393_s6 + $0x20] sm:$0xff]  ;;  %v451_v47 = vld [vmem:[%s1393_s6 + $0x28] sm:$0xff] }
  0x80   : > { %v350_v14 = vsub.f32 %v328_v1, %v348_v11  ;;  %v351_v15 = vsub.f32 %v329_v2, %v348_v11  ;;  %v352_v16 = vsub.f32 %v330_v3, %v348_v11  ;;  %v353_v17 = vsub.f32 %v331_v5, %v348_v11  ;;  %v452_v48 = vld [vmem:[%s1393_s6 + $0x30] sm:$0xff]  ;;  %v1461_v49 = vld [vmem:[%s1380_s10 + $0x38] sm:$0xff]  ;;  %462 = vst [vmem:[%s1393_s6] sm:$0xff] %v454_v39  ;;  %v422_v5 = vld [vmem:[%s1391_s9] sm:$0xff]  ;;  %s1545_s10 = scalar_lea.sflag [#allocation9], %s475_s21  ;;  %p938_p1 = pnand %p937_p8, %p1706_p4 }
  0x81   : > { %v354_v23 = vsub.f32 %v332_v6, %v349_v18  ;;  %v355_v24 = vsub.f32 %v333_v8, %v349_v18  ;;  %v356_v25 = vsub.f32 %v334_v9, %v349_v18  ;;  %v357_v27 = vsub.f32 %v335_v12, %v349_v18  ;;  %v453_v53 = vld [vmem:[%s1393_s6 + $0x38] sm:$0xff]  ;;  %463 = vst [vmem:[%s1393_s6 + $0x8] sm:$0xff] %v455_v43  ;;  %v423_v7 = vld [vmem:[%s1391_s9 + $0x8] sm:$0xff]  ;;  %v424_v8 = vld [vmem:[%s1391_s9 + $0x10] sm:$0xff] }
  0x82   : > { %v358_v19 = vmul.f32 1.442695, %v350_v14  ;;  %v360_v20 = vmul.f32 1.442695, %v351_v15  ;;  %v362_v21 = vmul.f32 1.442695, %v352_v16  ;;  %v457_v45 = vadd.f32 %v449_v42, %v1438_v30  ;;  %p939_p11 = pneg %p938_p1 }
  0x83   : > { %v364_v22 = vmul.f32 1.442695, %v353_v17  ;;  %v366_v32 = vmul.f32 1.442695, %v354_v23  ;;  %v368_v33 = vmul.f32 1.442695, %v355_v24  ;;  %v458_v50 = vadd.f32 %v450_v46, %v1442_v35 }
  0x84   : > { %856 = vpow2.f32 %v358_v19  ;;  %v370_v34 = vmul.f32 1.442695, %v356_v25  ;;  %v372_v38 = vmul.f32 1.442695, %v357_v27  ;;  %v459_v51 = vadd.f32 %v451_v47, %v1445_v36  ;;  %464 = vst [vmem:[%s1393_s6 + $0x10] sm:$0xff] %v456_v44  ;;  %465 = vst [vmem:[%s1393_s6 + $0x18] sm:$0xff] %v457_v45 }
  0x85   : > { %858 = vpow2.f32 %v360_v20  ;;  %v460_v52 = vadd.f32 %v452_v48, %v1448_v37  ;;  %v461_v54 = vadd.f32 %v453_v53, %v1461_v49  ;;  %466 = vst [vmem:[%s1393_s6 + $0x20] sm:$0xff] %v458_v50  ;;  %v425_v9 = vld [vmem:[%s1391_s9 + $0x18] sm:$0xff]  ;;  %v426_v14 = vld [vmem:[%s1391_s9 + $0x20] sm:$0xff]  ;;  %v391_v20 = vld [vmem:[%s1389_s18 + $0x8] sm:$0xff] }
  0x86   : > { %860 = vpow2.f32 %v362_v21  ;;  %467 = vst [vmem:[%s1393_s6 + $0x28] sm:$0xff] %v459_v51  ;;  %v390_v15 = vld [vmem:[%s1389_s18] sm:$0xff]  ;;  %v392_v21 = vld [vmem:[%s1389_s18 + $0x10] sm:$0xff]  ;;  %v427_v24 = vld [vmem:[%s1391_s9 + $0x28] sm:$0xff] }
  0x87   : > { %862 = vpow2.f32 %v364_v22  ;;  %468 = vst [vmem:[%s1393_s6 + $0x30] sm:$0xff] %v460_v52  ;;  %469 = vst [vmem:[%s1393_s6 + $0x38] sm:$0xff] %v461_v54  ;;  %v393_v22 = vld [vmem:[%s1389_s18 + $0x18] sm:$0xff]  ;;  %v428_v25 = vld [vmem:[%s1391_s9 + $0x30] sm:$0xff] }
  0x88   : > { %864 = vpow2.f32 %v366_v32  ;;  %v429_v27 = vld [vmem:[%s1391_s9 + $0x38] sm:$0xff]  ;;  %v394_v42 = vld [vmem:[%s1389_s18 + $0x20] sm:$0xff]  ;;  %v395_v47 = vld [vmem:[%s1389_s18 + $0x28] sm:$0xff] }
  0x89   : > { %866 = vpow2.f32 %v368_v33  ;;  %v396_v48 = vld [vmem:[%s1389_s18 + $0x30] sm:$0xff]  ;;  %v397_v50 = vld [vmem:[%s1389_s18 + $0x38] sm:$0xff] }
  0x8a   : > { %868 = vpow2.f32 %v370_v34 }
  0x8b   : > { %870 = vpow2.f32 %v372_v38 }
  0x8e   : > { %v857_v55 = vpop.eup %856 }
  0x8f   : > { %v859_v56 = vpop.eup %858 }
  0x90   : > { %v861_v57 = vpop.eup %860  ;;  %v374_v58 = vadd.f32 %v859_v56, %v857_v55 }
  0x91   : > { %v863_v59 = vpop.eup %862 }
  0x92   : > { %v865_v60 = vpop.eup %864  ;;  %v376_v61 = vadd.f32 %v861_v57, %v374_v58 }
  0x93   : > { %v867_v62 = vpop.eup %866 }
  0x94   : > { %v869_v63 = vpop.eup %868  ;;  %v378_v0 = vadd.f32 %v863_v59, %v376_v61  ;;  %v375_v1 = vadd.f32 %v867_v62, %v865_v60 }
  0x95   : > { %v871_v2 = vpop.eup %870 }
  0x96   : > { %872 = vrcp.f32 %v378_v0  ;;  %v377_v3 = vadd.f32 %v869_v63, %v375_v1 }
  0x98   : > { %v379_v4 = vadd.f32 %v871_v2, %v377_v3 }
  0x9a   : > { %874 = vrcp.f32 %v379_v4 }
  0xa0   : > { %v873_v6 = vpop.eup %872 }
  0xa1   : > { %v382_v10 = vmul.f32 %v873_v6, %v857_v55  ;;  %v383_v11 = vmul.f32 %v873_v6, %v859_v56  ;;  %v384_v12 = vmul.f32 %v873_v6, %v861_v57  ;;  %v385_v13 = vmul.f32 %v873_v6, %v863_v59 }
  0xa3   : > { %v430_v16 = vadd.f32 %v422_v5, %v382_v10  ;;  %v431_v17 = vadd.f32 %v423_v7, %v383_v11  ;;  %v432_v18 = vadd.f32 %v424_v8, %v384_v12  ;;  %v433_v19 = vadd.f32 %v425_v9, %v385_v13 }
  0xa4   : > { %v875_v23 = vpop.eup %874  ;;  %v398_v31 = vmul.f32 %v382_v10, %v1429_v26  ;;  %v399_v32 = vmul.f32 %v383_v11, %v1432_v28  ;;  %v400_v33 = vmul.f32 %v384_v12, %v1435_v29  ;;  %v401_v34 = vmul.f32 %v385_v13, %v1438_v30 }
  0xa5   : > { %438 = vst [vmem:[%s1391_s9] sm:$0xff] %v430_v16  ;;  %439 = vst [vmem:[%s1391_s9 + $0x8] sm:$0xff] %v431_v17  ;;  %v386_v38 = vmul.f32 %v875_v23, %v865_v60  ;;  %v387_v39 = vmul.f32 %v875_v23, %v867_v62  ;;  %v388_v40 = vmul.f32 %v875_v23, %v869_v63 }
  0xa6   : > { %440 = vst [vmem:[%s1391_s9 + $0x10] sm:$0xff] %v432_v18  ;;  %441 = vst [vmem:[%s1391_s9 + $0x18] sm:$0xff] %v433_v19  ;;  %v389_v26 = vmul.f32 %v875_v23, %v871_v2  ;;  %v406_v28 = vadd.f32 %v398_v31, %v390_v15  ;;  %v407_v29 = vadd.f32 %v399_v32, %v391_v20 }
  0xa7   : > { %v408_v30 = vadd.f32 %v400_v33, %v392_v21  ;;  %v409_v41 = vadd.f32 %v401_v34, %v393_v22  ;;  %v434_v43 = vadd.f32 %v426_v14, %v386_v38  ;;  %v435_v44 = vadd.f32 %v427_v24, %v387_v39 }
  0xa8   : > { %v436_v45 = vadd.f32 %v428_v25, %v388_v40  ;;  %v437_v46 = vadd.f32 %v429_v27, %v389_v26  ;;  %414 = vst [vmem:[%s1389_s18] sm:$0xff] %v406_v28  ;;  %415 = vst [vmem:[%s1389_s18 + $0x8] sm:$0xff] %v407_v29  ;;  %v402_v51 = vmul.f32 %v386_v38, %v1442_v35 }
  0xa9   : > { %416 = vst [vmem:[%s1389_s18 + $0x10] sm:$0xff] %v408_v30  ;;  %417 = vst [vmem:[%s1389_s18 + $0x18] sm:$0xff] %v409_v41  ;;  %v403_v52 = vmul.f32 %v387_v39, %v1445_v36  ;;  %v404_v53 = vmul.f32 %v388_v40, %v1448_v37  ;;  %v405_v54 = vmul.f32 %v389_v26, %v1461_v49 }
  0xaa   : > { %442 = vst [vmem:[%s1391_s9 + $0x20] sm:$0xff] %v434_v43  ;;  %443 = vst [vmem:[%s1391_s9 + $0x28] sm:$0xff] %v435_v44  ;;  %v410_v35 = vadd.f32 %v402_v51, %v394_v42 }
  0xab   : > { %444 = vst [vmem:[%s1391_s9 + $0x30] sm:$0xff] %v436_v45  ;;  %445 = vst [vmem:[%s1391_s9 + $0x38] sm:$0xff] %v437_v46  ;;  %v411_v36 = vadd.f32 %v403_v52, %v395_v47  ;;  %v412_v37 = vadd.f32 %v404_v53, %v396_v48  ;;  %v413_v55 = vadd.f32 %v405_v54, %v397_v50  ;;  %s1130_s9 = smov [#allocation8]  }
  0xac   : > { %s940_s6 = sshll.u32 %s1130_s9, 4  ;;  %s941_s6 = int_to_ptr.vmem [resolvable:$false] %s940_s6 }
  0xad   : > { %s942_s28 = scalar_lea.vmem %s941_s6, 2048  ;;  %p943_p13 = scmp.lt.s32.totalorder %s1513_s13, %s941_s6 }
  0xae   : > { %p944_p12 = scmp.lt.s32.totalorder %s942_s28, %s936_s17 }
  0xb0   : > { %p945_p2 = por %p944_p12, %p943_p13 }
  0xb2   : > { %p946_p10 = pnand %p945_p2, %p939_p11 }
  0xb4   : > { %949 = shalt.err (!%p946_p10)
}
  0xb5   : > { %s950_s26 = scalar_lea.hbm %s1507_s14, 1024  ;;  %s954_s20 = scalar_lea.hbm %s1672_s3, 2048 }
  0xb6   : > { %p951_p0 = scmp.ne.s32.totalorder %s1507_s14, %s950_s26  ;;  %p955_p5 = scmp.lt.u32.totalorder %s1507_s14, %s1672_s3 }
  0xb7   : > { %p956_p7 = scmp.lt.u32.totalorder %s954_s20, %s950_s26  ;;  %p958_p8 = scmp.lt.u32.totalorder %s950_s26, %s1507_s14 }
  0xb8   : > { %p952_p6 = pnand %p951_p0, %p1706_p4 }
  0xb9   : > { %p957_p3 = por %p956_p7, %p955_p5 }
  0xba   : > { %p953_p9 = pneg %p952_p6 }
  0xbb   : > { %p959_p1 = por %p958_p8, %p957_p3 }
  0xbd   : > { %p960_p11 = pnand %p959_p1, %p953_p9 }
  0xbf   : > { %963 = shalt.err (!%p960_p11)
}
  0xc0   : > { %s1131_s7 = smov 128   ;;  %s1132_s23 = smov 8  }
  0xc1   : > { %738 = dma.vmem_to_hbm [thread:$0]  (%p1706_p4), %s1513_s13, 1024, %s1507_s14, %s1545_s10, %s1131_s7, %s1131_s7, %s1132_s23  }
  0xc2   : > { %s964_s17 = scalar_lea.vmem %s1529_s22, 1024  ;;  %s1133_s9 = smov [#allocation10]  }
  0xc3   : > { %p965_p13 = scmp.ne.s32.totalorder %s1529_s22, %s964_s17  ;;  %s968_s6 = sshll.u32 %s1133_s9, 4  ;;  %s969_s6 = int_to_ptr.vmem [resolvable:$false] %s968_s6 }
  0xc4   : > { %s970_s28 = scalar_lea.vmem %s969_s6, 2048  ;;  %p971_p10 = scmp.lt.s32.totalorder %s1529_s22, %s969_s6 }
  0xc5   : > { %p966_p12 = pnand %p965_p13, %p1706_p4  ;;  %p972_p0 = scmp.lt.s32.totalorder %s970_s28, %s964_s17 }
  0xc7   : > { %p967_p2 = pneg %p966_p12  ;;  %p973_p6 = por %p972_p0, %p971_p10 }
  0xc9   : > { %p974_p9 = pnand %p973_p6, %p967_p2 }
  0xcb   : > { %977 = shalt.err (!%p974_p9)
}
  0xcc   : > { %s978_s13 = scalar_lea.hbm %s1519_s27, 1024  ;;  %s982_s21 = scalar_lea.hbm %s1673_s4, 2048 }
  0xcd   : > { %p979_p5 = scmp.ne.s32.totalorder %s1519_s27, %s978_s13  ;;  %p983_p8 = scmp.lt.u32.totalorder %s1519_s27, %s1673_s4 }
  0xce   : > { %p984_p1 = scmp.lt.u32.totalorder %s982_s21, %s978_s13  ;;  %p986_p13 = scmp.lt.u32.totalorder %s978_s13, %s1519_s27 }
  0xcf   : > { %p980_p7 = pnand %p979_p5, %p1706_p4 }
  0xd0   : > { %p985_p11 = por %p984_p1, %p983_p8 }
  0xd1   : > { %p981_p3 = pneg %p980_p7 }
  0xd2   : > { %p987_p12 = por %p986_p13, %p985_p11 }
  0xd4   : > { %p988_p2 = pnand %p987_p12, %p981_p3 }
  0xd6   : > { %991 = shalt.err (!%p988_p2)
}
  0xd7   : > { %739 = dma.vmem_to_hbm [thread:$0]  (%p1706_p4), %s1529_s22, 1024, %s1519_s27, %s1545_s10, %s1131_s7, %s1131_s7, %s1132_s23  }
  0xd8   : > { %418 = vst [vmem:[%s1389_s18 + $0x20] sm:$0xff] %v410_v35  ;;  %419 = vst [vmem:[%s1389_s18 + $0x28] sm:$0xff] %v411_v36  ;;  %s1603_s12 = scalar_lea.sflag [#allocation4], %s279_s0  ;;  %s992_s29 = scalar_lea.vmem %s1541_s5, 1024 }
  0xd9   : > { %420 = vst [vmem:[%s1389_s18 + $0x30] sm:$0xff] %v412_v37  ;;  %421 = vst [vmem:[%s1389_s18 + $0x38] sm:$0xff] %v413_v55  ;;  %p993_p10 = scmp.ne.s32.totalorder %s1541_s5, %s992_s29  ;;  %s1134_s17 = smov [#allocation7]  }
  0xda   : > { %s996_s9 = sshll.u32 %s1134_s17, 4  ;;  %s997_s9 = int_to_ptr.vmem [resolvable:$false] %s996_s9 }
  0xdb   : > { %p994_p0 = pnand %p993_p10, %p1706_p4  ;;  %s998_s6 = scalar_lea.vmem %s997_s9, 2048 }
  0xdc   : > { %p999_p9 = scmp.lt.s32.totalorder %s1541_s5, %s997_s9  ;;  %p1000_p5 = scmp.lt.s32.totalorder %s998_s6, %s992_s29 }
  0xdd   : > { %p995_p6 = pneg %p994_p0 }
  0xde   : > { %p1001_p7 = por %p1000_p5, %p999_p9 }
  0xe0   : > { %p1002_p3 = pnand %p1001_p7, %p995_p6 }
  0xe2   : > { %1005 = shalt.err (!%p1002_p3)
}
  0xe3   : > { %s1006_s0 = scalar_lea.hbm %s1539_s24, 1024  ;;  %s1010_s27 = scalar_lea.hbm %s1671_s2, 2048 }
  0xe4   : > { %p1007_p8 = scmp.ne.s32.totalorder %s1539_s24, %s1006_s0  ;;  %p1011_p13 = scmp.lt.u32.totalorder %s1539_s24, %s1671_s2 }
  0xe5   : > { %p1012_p12 = scmp.lt.u32.totalorder %s1010_s27, %s1006_s0  ;;  %p1014_p10 = scmp.lt.u32.totalorder %s1006_s0, %s1539_s24 }
  0xe6   : > { %p1008_p1 = pnand %p1007_p8, %p1706_p4 }
  0xe7   : > { %p1013_p2 = por %p1012_p12, %p1011_p13 }
  0xe8   : > { %p1009_p11 = pneg %p1008_p1 }
  0xe9   : > { %p1015_p0 = por %p1014_p10, %p1013_p2 }
  0xeb   : > { %p1016_p6 = pnand %p1015_p0, %p1009_p11 }
  0xed   : > { %1019 = shalt.err (!%p1016_p6)
}
  0xee   : > { %737 = dma.vmem_to_hbm [thread:$0]  (%p1706_p4), %s1541_s5, 1024, %s1539_s24, %s1603_s12, %s1131_s7, %s1131_s7, %s1132_s23  }
  0xef PF: > { %p761_p9 = scmp.ge.s32.totalorder %s1122_s25, 2  ;;  %s541_s13 = sand.u32 1, %s1082_s15  }
  0xf0   : > { %p1707_p5 = scmp.ne.s32.totalorder %s1697_s11, 0  ;;  %s542_s14 = scalar_lea.sflag [#allocation4], %s541_s13 }
  0xf2   : > { %p751_p7 = pnand %p761_p9, %p1707_p5 }
  0xf4   : > { %1073 = dma.done.wait (!%p751_p7), %s542_s14, 1024  }
  0xf5   : > { %1075 = vsyncadd (!%p751_p7), %s542_s14, 4294966272  ;;  %s1708_s30 = sadd.s32 4294967294, %s1122_s25  }
  0xf6   : > { %s550_s26 = sand.u32 1, %s1708_s30  }
  0xf7   : > { %s551_s21 = scalar_lea.sflag [#allocation9], %s550_s26 }
  0xf8   : > { %1077 = dma.done.wait (!%p751_p7), %s551_s21, 2048  }
  0xf9   : > { %1079 = vsyncadd (!%p751_p7), %s551_s21, 4294965248  ;;  %s27_s25 = sadd.s32 1, %s1122_s25   ;;  %s1709_s5 = sld [smem:[#allocation15_spill]] }
  0xfa   : > { %p24_p4 = scmp.ge.s32.totalorder %s27_s25, 6   ;;  %s1710_s17 = sld [smem:[#allocation21_spill]] }
  0xfb   : > { %s1711_s24 = sld [smem:[#allocation16_spill]]  ;;  %s1712_s20 = sld [smem:[#allocation22_spill]] }
  0xfc   : > { %s1713_s21 = sld [smem:[#allocation17_spill]]  ;;  %s1714_s22 = sld [smem:[#allocation18_spill]] }
  0xfd   : > { %s1715_s23 = sld [smem:[#allocation19_spill]]  ;;  %s1716_s11 = sld [smem:[#allocation20_spill]] }
  0xfe   : > { %s1717_s15 = smov %s1086_s16  ;;  %s1719_s18 = smov %s1098_s19 }
  0xff   : > { %s1718_s16 = smov %s1709_s5  ;;  %26 = sbr.rel (!%p24_p4) target bundleno = 15 (0xf), region = 122 }
 0x101   : > { %s1720_s19 = smov %s1711_s24 }
 0x103   : > { %s1721_s24 = smov %s1716_s11 }
 0x106   :  { %565 = vsyncpa [#allocation3], 1 }
 0x107   :  { %567 = vsyncpa [#allocation3 + $0x1], 1 }
 0x108   :  { %568 = vsyncpa [#allocation6], 1 }
 0x109   :  { %570 = vsyncpa [#allocation6 + $0x1], 1 }
 0x10a   :  { %571 = vsyncpa [#allocation4], 1 }
 0x10b   :  { %573 = vsyncpa [#allocation4 + $0x1], 1 }
 0x10c   :  { %574 = vsyncpa [#allocation9], 1 }
 0x10d   :  { %576 = vsyncpa [#allocation9 + $0x1], 1 }

</bundles_post_ra>
